<compile_context>
chip_gen: v7x
topology: tpu7x:2x2x1
jax: 0.10.0
libtpu: 0.0.40
codegen_flags: <defaults>
</compile_context>

<pallas_src>
import jax
import jax.numpy as jnp
from jax.experimental import pallas as pl
from jax.experimental.pallas import tpu as pltpu


_VMEM_LIMIT_BYTES = 48 * 1024 * 1024   # safe on v5e/v6e (128 MiB) and v7x (64 MiB)


def _round_up(x, m):
    return (x + m - 1) // m * m


def _bdot(a, w_bf16):
    """bf16 MXU matmul with f32 accumulation (activation cast at the dot)."""
    return jnp.dot(a.astype(jnp.bfloat16), w_bf16, preferred_element_type=jnp.float32)


# ----------------------------------------------------------------------------
# Pallas kernel 1: 1x1 conv (input_proj), computed in NCHW directly:
#   out[b, :, s-tile] = W(hidden, C) @ x[b, :, s-tile] + bias
# x arrives bf16 (cast once in the wrapper); output is f32 NCHW, lane-dense.
# ----------------------------------------------------------------------------
def _conv1x1_kernel(x_ref, w_ref, b_ref, o_ref):
    x = x_ref[0]                                                # (C, TS) bf16
    y = jnp.dot(w_ref[...], x, preferred_element_type=jnp.float32)
    o_ref[0] = y + b_ref[...]                                   # (hidden, TS)


def input_proj_conv1x1(src_nchw, w_oc_bf16, b_col_f32):
    """src_nchw: (B, C, Hs, Ws) f32; w: (hidden, C) bf16; b: (hidden, 1) f32."""
    B, C, Hs, Ws = src_nchw.shape
    hidden = w_oc_bf16.shape[0]
    S = Hs * Ws
    TS = min(512, _round_up(S, 128))            # lane-dense spatial tile
    S_pad = _round_up(S, TS)

    # Cast to bf16 once here: halves the HBM read stream of this mem-bound
    # kernel and removes the per-tile cast from the kernel body.
    x = src_nchw.reshape(B, C, S).astype(jnp.bfloat16)
    if S_pad != S:
        x = jnp.pad(x, ((0, 0), (0, 0), (0, S_pad - S)))

    out = pl.pallas_call(
        _conv1x1_kernel,
        out_shape=jax.ShapeDtypeStruct((B, hidden, S_pad), jnp.float32),
        grid=(B, S_pad // TS),
        in_specs=[
            pl.BlockSpec((1, C, TS), lambda b, s: (b, 0, s)),
            pl.BlockSpec((hidden, C), lambda b, s: (0, 0)),     # resident weight
            pl.BlockSpec((hidden, 1), lambda b, s: (0, 0)),     # resident bias
        ],
        out_specs=pl.BlockSpec((1, hidden, TS), lambda b, s: (b, 0, s)),
        compiler_params=pltpu.CompilerParams(
            dimension_semantics=("parallel", "parallel"),
            vmem_limit_bytes=_VMEM_LIMIT_BYTES),
    )(x, w_oc_bf16, b_col_f32)

    return out[:, :, :S].reshape(B, hidden, Hs, Ws)             # NCHW


# ----------------------------------------------------------------------------
# Pallas kernel 2: fused prediction heads, tiled over B*Q rows.
#   sub/obj bbox MLPs + sigmoid, obj_class Linear, semantic-pos fusion
#   (softmax @ sem-embed, pos-embed Linear+ReLU, rel_proj as split-weight sum),
#   attn/spatial/contacting Linears.  Results written into one (TM, 128) slab.
# ----------------------------------------------------------------------------
def _heads_kernel(
    hopd, inter,
    sw1, sb1, sw2, sb2, sw3, sb3,          # sub_bbox_embed MLP
    ow1, ob1, ow2, ob2, ow3, ob3,          # obj_bbox_embed MLP
    ocw, ocb,                              # obj_class_embed
    sem,                                   # semantic_pos_obj_embed (+ zero bg row)
    pw, pb,                                # semantic_pos_pos_embed Linear
    rwa, rwb, rwc, rwd, rb,                # semantic_pos_rel_proj (split)
    aw, ab, spw, spb, cw, cb,              # attn / spatial / contacting heads
    out_ref,                               # (TM, OUT_W) coalesced output slab
):
    h = hopd[...]                          # (TM, H) bf16
    x = inter[...]                         # (TM, H) bf16

    def mlp3(t, w1, b1, w2, b2, w3, b3):
        t = jnp.maximum(_bdot(t, w1[...]) + b1[...], 0.0)
        t = jnp.maximum(_bdot(t, w2[...]) + b2[...], 0.0)
        return _bdot(t, w3[...]) + b3[...]

    sub_coord = jax.nn.sigmoid(mlp3(h, sw1, sb1, sw2, sb2, sw3, sb3))
    obj_coord = jax.nn.sigmoid(mlp3(h, ow1, ob1, ow2, ob2, ow3, ob3))
    obj_logits = _bdot(h, ocw[...]) + ocb[...]

    # softmax in f32; `sem` carries a zero background row so the full softmax
    # feeds the MXU (no sub-128 lane slice).  Denominator via EUP approx recip.
    m = jnp.max(obj_logits, axis=-1, keepdims=True)
    e = jnp.exp(obj_logits - m)
    sm = e * pl.reciprocal(jnp.sum(e, axis=-1, keepdims=True), approx=True)
    obj_embed = _bdot(sm, sem[...])

    # semantic_pos_pos_embed = Linear(4, H//2) -> ReLU -> Dropout(eval no-op)
    sub_pos = jnp.maximum(_bdot(sub_coord, pw[...]) + pb[...], 0.0)
    obj_pos = jnp.maximum(_bdot(obj_coord, pw[...]) + pb[...], 0.0)

    # concat([inter, obj_embed, sub_pos, obj_pos]) @ W_rel == sum of partial dots
    fused = (_bdot(x, rwa[...]) + _bdot(obj_embed, rwb[...])
             + _bdot(sub_pos, rwc[...]) + _bdot(obj_pos, rwd[...]) + rb[...])

    attn = _bdot(fused, aw[...]) + ab[...]
    spat = _bdot(fused, spw[...]) + spb[...]
    cont = _bdot(fused, cw[...]) + cb[...]

    # Coalesced lane-padded output slab: one lane-dense writeback DMA per tile.
    no = ocw.shape[1]
    na = aw.shape[1]
    ns = spw.shape[1]
    nc = cw.shape[1]
    out_ref[...] = jnp.zeros_like(out_ref)
    c = 0
    out_ref[:, c:c + no] = obj_logits
    c += no
    out_ref[:, c:c + 4] = sub_coord
    c += 4
    out_ref[:, c:c + 4] = obj_coord
    c += 4
    out_ref[:, c:c + na] = attn
    c += na
    out_ref[:, c:c + ns] = spat
    c += ns
    out_ref[:, c:c + nc] = cont


def run_heads(hopd, inter, params):
    """hopd/inter: (B, Q, H) f32.  Returns dict matching CDNDSGG output."""
    B, Q, H = hopd.shape
    BQ = B * Q
    TM = min(128, _round_up(BQ, 16))      # multiple of 16: bf16 sublane packing
    BQ_pad = _round_up(BQ, TM)

    hopd2 = hopd.reshape(BQ, H)
    inter2 = inter.reshape(BQ, H)
    if BQ_pad != BQ:
        pad = ((0, BQ_pad - BQ), (0, 0))
        hopd2 = jnp.pad(hopd2, pad)
        inter2 = jnp.pad(inter2, pad)
    # Rows are only ever MXU operands -> stream them as bf16 (half the DMA,
    # no in-kernel cast).  Same numerics as casting at each dot.
    hopd2 = hopd2.astype(jnp.bfloat16)
    inter2 = inter2.astype(jnp.bfloat16)

    p = params
    weights = (
        p["sub_w1"], p["sub_b1"], p["sub_w2"], p["sub_b2"], p["sub_w3"], p["sub_b3"],
        p["obj_w1"], p["obj_b1"], p["obj_w2"], p["obj_b2"], p["obj_w3"], p["obj_b3"],
        p["oc_w"], p["oc_b"],
        p["sem"],
        p["pos_w"], p["pos_b"],
        p["rel_wa"], p["rel_wb"], p["rel_wc"], p["rel_wd"], p["rel_b"],
        p["attn_w"], p["attn_b"], p["spat_w"], p["spat_b"], p["cont_w"], p["cont_b"],
    )

    n_obj_logits = p["oc_w"].shape[1]
    n_attn = p["attn_w"].shape[1]
    n_spat = p["spat_w"].shape[1]
    n_cont = p["cont_w"].shape[1]
    total = n_obj_logits + 4 + 4 + n_attn + n_spat + n_cont
    out_w = _round_up(total, 128)

    row_spec = pl.BlockSpec((TM, H), lambda i: (i, 0))
    weight_specs = [pl.BlockSpec(w.shape, lambda i: (0, 0)) for w in weights]

    slab = pl.pallas_call(
        _heads_kernel,
        out_shape=jax.ShapeDtypeStruct((BQ_pad, out_w), jnp.float32),
        grid=(BQ_pad // TM,),
        in_specs=[row_spec, row_spec] + weight_specs,
        out_specs=pl.BlockSpec((TM, out_w), lambda i: (i, 0)),
        compiler_params=pltpu.CompilerParams(
            dimension_semantics=("parallel",),
            vmem_limit_bytes=_VMEM_LIMIT_BYTES),
    )(hopd2, inter2, *weights)

    slab = slab[:BQ]                      # drop padded rows
    offs = [0]

    def take(n):
        a = slab[:, offs[0]:offs[0] + n]
        offs[0] += n
        return a

    obj_logits = take(n_obj_logits)
    sub_coord = take(4)
    obj_coord = take(4)
    attn_l = take(n_attn)
    spat_l = take(n_spat)
    cont_l = take(n_cont)
    return {
        "pred_obj_logits": obj_logits.reshape(B, Q, n_obj_logits),
        "pred_sub_boxes": sub_coord.reshape(B, Q, 4),
        "pred_obj_boxes": obj_coord.reshape(B, Q, 4),
        "pred_attn_logits": attn_l.reshape(B, Q, n_attn),
        "pred_spatial_logits": spat_l.reshape(B, Q, n_spat),
        "pred_contacting_logits": cont_l.reshape(B, Q, n_cont),
    }


# ----------------------------------------------------------------------------
# Parameter init (deterministic, kaiming-uniform-ish).  Linear weights stored
# (in, out) in bf16 (cast once here, not per grid step); biases stay f32.
# ----------------------------------------------------------------------------
def _linear(key, din, dout):
    bound = (6.0 / din) ** 0.5
    w = jax.random.uniform(key, (din, dout), jnp.float32, -bound, bound)
    b = jnp.zeros((1, dout), jnp.float32)
    return w.astype(jnp.bfloat16), b


def init_params(key, C, H, n_obj, n_attn, n_spat, n_cont, num_queries, sem_dim=200):
    ks = jax.random.split(key, 16)
    p = {}
    # input_proj 1x1 conv, stored (out, in) == (hidden, C) for the NCHW kernel.
    bound = (6.0 / C) ** 0.5
    p["conv_w"] = jax.random.uniform(
        ks[0], (H, C), jnp.float32, -bound, bound).astype(jnp.bfloat16)
    p["conv_b"] = jnp.zeros((H, 1), jnp.float32)
    # bbox MLPs: (H,H), (H,H), (H,4)
    p["sub_w1"], p["sub_b1"] = _linear(ks[1], H, H)
    p["sub_w2"], p["sub_b2"] = _linear(ks[2], H, H)
    p["sub_w3"], p["sub_b3"] = _linear(ks[3], H, 4)
    p["obj_w1"], p["obj_b1"] = _linear(ks[4], H, H)
    p["obj_w2"], p["obj_b2"] = _linear(ks[5], H, H)
    p["obj_w3"], p["obj_b3"] = _linear(ks[6], H, 4)
    # class heads
    p["oc_w"], p["oc_b"] = _linear(ks[7], H, n_obj + 1)
    p["attn_w"], p["attn_b"] = _linear(ks[8], H, n_attn + 1)
    p["spat_w"], p["spat_b"] = _linear(ks[9], H, n_spat)
    p["cont_w"], p["cont_b"] = _linear(ks[10], H, n_cont)
    # semantic embedding, padded with a zero background row so the full softmax
    # (n_obj+1 columns) can matmul it directly -> lane-dense MXU operand.
    sem = jax.random.normal(ks[11], (n_obj, sem_dim), jnp.float32) * 0.1
    p["sem"] = jnp.concatenate(
        [sem, jnp.zeros((1, sem_dim), jnp.float32)], axis=0).astype(jnp.bfloat16)
    # pos embed Linear(4, H//2)
    p["pos_w"], p["pos_b"] = _linear(ks[12], 4, H // 2)
    # rel_proj Linear(2H + sem_dim, H), split to avoid an in-kernel concat:
    #   concat order = [interaction (H), obj_embed (sem_dim), sub_pos (H/2), obj_pos (H/2)]
    kin = 2 * H + sem_dim
    rbound = (6.0 / kin) ** 0.5
    rel_w = jax.random.uniform(
        ks[13], (kin, H), jnp.float32, -rbound, rbound).astype(jnp.bfloat16)
    p["rel_b"] = jnp.zeros((1, H), jnp.float32)
    p["rel_wa"] = rel_w[:H]
    p["rel_wb"] = rel_w[H:H + sem_dim]
    p["rel_wc"] = rel_w[H + sem_dim:H + sem_dim + H // 2]
    p["rel_wd"] = rel_w[H + sem_dim + H // 2:]
    # query embedding
    p["query_embed"] = jax.random.normal(ks[14], (num_queries, H), jnp.float32)
    return p


# ----------------------------------------------------------------------------
# Deterministic stub for backbone/transformer (external modules).
# ----------------------------------------------------------------------------
def stub_transformer(proj_nchw, query_embed, B):
    # proj_nchw: (B, H, Hs, Ws) -> global pool -> (B, H); broadcast over queries.
    pooled = jnp.mean(proj_nchw, axis=(2, 3))                     # (B, H)
    hopd = pooled[:, None, :] + query_embed[None, :, :]           # (B, Q, H)
    inter = jnp.tanh(pooled)[:, None, :] * query_embed[None, :, :]
    return hopd, inter


# ----------------------------------------------------------------------------
# Plain-JAX reference of the heads with the same bf16-matmul / f32-accumulate
# precision policy (exact softmax divide), for correctness checking.
# ----------------------------------------------------------------------------
def heads_reference(hopd, inter, p):
    def mlp3(t, w1, b1, w2, b2, w3, b3):
        t = jnp.maximum(_bdot(t, w1) + b1, 0.0)
        t = jnp.maximum(_bdot(t, w2) + b2, 0.0)
        return _bdot(t, w3) + b3

    sub = jax.nn.sigmoid(mlp3(hopd, p["sub_w1"], p["sub_b1"], p["sub_w2"],
                              p["sub_b2"], p["sub_w3"], p["sub_b3"]))
    obj = jax.nn.sigmoid(mlp3(hopd, p["obj_w1"], p["obj_b1"], p["obj_w2"],
                              p["obj_b2"], p["obj_w3"], p["obj_b3"]))
    obj_logits = _bdot(hopd, p["oc_w"]) + p["oc_b"]
    sm = jax.nn.softmax(obj_logits, axis=-1)          # zero bg row in sem == [:, :-1]
    obj_embed = _bdot(sm, p["sem"])
    sub_pos = jnp.maximum(_bdot(sub, p["pos_w"]) + p["pos_b"], 0.0)
    obj_pos = jnp.maximum(_bdot(obj, p["pos_w"]) + p["pos_b"], 0.0)
    fused = (_bdot(inter, p["rel_wa"]) + _bdot(obj_embed, p["rel_wb"])
             + _bdot(sub_pos, p["rel_wc"]) + _bdot(obj_pos, p["rel_wd"]) + p["rel_b"])
    return {
        "pred_obj_logits": obj_logits,
        "pred_sub_boxes": sub,
        "pred_obj_boxes": obj,
        "pred_attn_logits": _bdot(fused, p["attn_w"]) + p["attn_b"],
        "pred_spatial_logits": _bdot(fused, p["spat_w"]) + p["spat_b"],
        "pred_contacting_logits": _bdot(fused, p["cont_w"]) + p["cont_b"],
    }


if __name__ == "__main__":
    B, C, Hs, Ws = 2, 4, 16, 16             # backbone feature map (NCHW)
    HID, Q = 32, 8                          # transformer.d_model, num_queries
    N_OBJ, N_ATTN, N_SPAT, N_CONT = 10, 3, 6, 8

    key = jax.random.PRNGKey(0)
    k_src, k_par = jax.random.split(key)
    src = jax.random.normal(k_src, (B, C, Hs, Ws), jnp.float32)

    params = init_params(k_par, C, HID, N_OBJ, N_ATTN, N_SPAT, N_CONT, Q)

    # input_proj 1x1 conv (Pallas, NCHW-native, spatially tiled, bf16 stream)
    proj = jax.block_until_ready(
        input_proj_conv1x1(src, params["conv_w"], params["conv_b"]))

    # conv correctness check (same bf16-input / f32-accumulate policy)
    ref_proj = (jnp.einsum(
        "oc,bcs->bos", params["conv_w"],
        src.reshape(B, C, Hs * Ws).astype(jnp.bfloat16),
        preferred_element_type=jnp.float32)
        + params["conv_b"][None]).reshape(B, HID, Hs, Ws)
    assert jnp.allclose(proj, ref_proj, atol=1e-3, rtol=1e-3)

    # TODO(synk): external backbone/transformer stubbed deterministically.
    hopd, inter = stub_transformer(proj, params["query_embed"], B)

    # fused prediction heads (Pallas, row-tiled, coalesced output slab)
    out = run_heads(hopd, inter, params)
    jax.tree_util.tree_map(jax.block_until_ready, out)

    # correctness check vs plain-JAX reference
    ref = heads_reference(hopd.reshape(B * Q, HID), inter.reshape(B * Q, HID), params)
    for k in out:
        assert jnp.allclose(out[k].reshape(ref[k].shape), ref[k],
                            atol=1e-2, rtol=1e-2), k

    print("KERNEL_OK")
</pallas_src>

<mosaic_0001>
module attributes {stable_mosaic.version = 11 : i64} {
  func.func @_conv1x1_kernel(%arg0: i32, %arg1: i32, %arg2: memref<1x4x256xbf16, #tpu.memory_space<vmem>>, %arg3: memref<32x4xbf16, #tpu.memory_space<vmem>>, %arg4: memref<32x1xf32, #tpu.memory_space<vmem>>, %arg5: memref<1x32x256xf32, #tpu.memory_space<vmem>>) attributes {dimension_semantics = [#tpu.dimension_semantics<parallel>, #tpu.dimension_semantics<parallel>], iteration_bounds = array<i64: 2, 1>, scalar_prefetch = 0 : i64, scratch_operands = 0 : i64, tpu.core_type = #tpu.core_type<tc>, window_params = [{transform_indices = @transform_0, window_bounds = array<i64: 1, 4, 256>}, {pipeline_mode = #tpu.pipeline_mode<synchronous>, transform_indices = @transform_1, window_bounds = array<i64: 32, 4>}, {pipeline_mode = #tpu.pipeline_mode<synchronous>, transform_indices = @transform_2, window_bounds = array<i64: 32, 1>}, {transform_indices = @transform_3, window_bounds = array<i64: 1, 32, 256>}]} {
    %c0 = arith.constant 0 : index
    %c0_0 = arith.constant 0 : index
    %c0_1 = arith.constant 0 : index
    %0 = vector.load %arg2[%c0, %c0_0, %c0_1] : memref<1x4x256xbf16, #tpu.memory_space<vmem>>, vector<1x4x256xbf16>
    %1 = vector.shape_cast %0 : vector<1x4x256xbf16> to vector<4x256xbf16>
    %c0_2 = arith.constant 0 : index
    %c0_3 = arith.constant 0 : index
    %2 = vector.load %arg3[%c0_2, %c0_3] : memref<32x4xbf16, #tpu.memory_space<vmem>>, vector<32x4xbf16>
    %cst = arith.constant dense<0.000000e+00> : vector<32x256xf32>
    %3 = tpu.matmul %2, %1, %cst {dimension_numbers = #tpu.dot_dimension_numbers<[1], [0], [0], [1], [0, 0, 1, 1], [], []>} : vector<32x4xbf16>, vector<4x256xbf16>, vector<32x256xf32> -> vector<32x256xf32>
    %c0_4 = arith.constant 0 : index
    %c0_5 = arith.constant 0 : index
    %4 = vector.load %arg4[%c0_4, %c0_5] : memref<32x1xf32, #tpu.memory_space<vmem>>, vector<32x1xf32>
    %5 = vector.broadcast %4 : vector<32x1xf32> to vector<32x256xf32>
    %6 = arith.addf %3, %5 : vector<32x256xf32>
    %c0_6 = arith.constant 0 : index
    %c0_7 = arith.constant 0 : index
    %c0_8 = arith.constant 0 : index
    %7 = vector.load %arg5[%c0_6, %c0_7, %c0_8] : memref<1x32x256xf32, #tpu.memory_space<vmem>>, vector<1x32x256xf32>
    %8 = vector.shape_cast %7 : vector<1x32x256xf32> to vector<32x256xf32>
    %9 = vector.shape_cast %6 : vector<32x256xf32> to vector<1x32x256xf32>
    tpu.vector_store %arg5[%c0_6, %c0_7, %c0_8], %9 {strides = array<i32>} : memref<1x32x256xf32, #tpu.memory_space<vmem>>, vector<1x32x256xf32>,
    return
  }
  func.func @transform_0(%arg0: i32, %arg1: i32) -> (i32, i32, i32) {
    %c0_i32 = arith.constant 0 : i32
    %c0_i32_0 = arith.constant 0 : i32
    return %arg0, %c0_i32, %arg1 : i32, i32, i32
  }
  func.func @transform_1(%arg0: i32, %arg1: i32) -> (i32, i32) {
    %c0_i32 = arith.constant 0 : i32
    %c0_i32_0 = arith.constant 0 : i32
    %c0_i32_1 = arith.constant 0 : i32
    return %c0_i32, %c0_i32_0 : i32, i32
  }
  func.func @transform_2(%arg0: i32, %arg1: i32) -> (i32, i32) {
    %c0_i32 = arith.constant 0 : i32
    %c0_i32_0 = arith.constant 0 : i32
    %c0_i32_1 = arith.constant 0 : i32
    return %c0_i32, %c0_i32_0 : i32, i32
  }
  func.func @transform_3(%arg0: i32, %arg1: i32) -> (i32, i32, i32) {
    %c0_i32 = arith.constant 0 : i32
    %c0_i32_0 = arith.constant 0 : i32
    return %arg0, %c0_i32, %arg1 : i32, i32, i32
  }
}

</mosaic_0001>

<bundles_post_ra>
// kernel: tpu_custom_call.1
= control target key start
LH: loop header
LB: loop body
LE: loop exit
PB: predicated region body
PF: predicated region fallthrough
CT: control target
= control target key end

     0   :  { %8 = vsyncpa [#allocation3], 0  ;;  %s745_s0 = inlined_call_operand.vmem [shape: bf16[2,4,256], index: 0, kind: input, shape index: {}]   ;;  %s746_s1 = inlined_call_operand.vmem [shape: bf16[32,4], index: 1, kind: input, shape index: {}]   ;;  %s747_s2 = inlined_call_operand.vmem [shape: f32[32,1], index: 2, kind: input, shape index: {}]   ;;  %s748_s3 = inlined_call_operand.hbm [shape: f32[2,32,256], index: 3, kind: output, shape index: {}]  }
   0x1   :  { %10 = vsyncpa [#allocation3 + $0x1], 0  ;;  %s608_s12 = smov 0   ;;  %s610_s13 = smov 0  }
   0x2   :  { %s612_s14 = smov 0   ;;  %s614_s15 = smov 0  }
   0x3   :  { %s616_s16 = smov 0   ;;  %s618_s17 = smov 0  }
   0x4 LB: > { %s419_s18 = sadd.s32 4294967295, %s582_s17   ;;  %s420_s19 = sadd.s32 4294967294, %s582_s17   ;;  %s582_s17 = sphi %s618_s17, %s16_s17   ;;  %s578_s16 = sphi %s616_s16, %s755_s16   ;;  %s574_s15 = sphi %s614_s15, %s754_s15   ;;  %s570_s14 = sphi %s612_s14, %s753_s14   ;;  %s566_s13 = sphi %s610_s13, %s752_s13   ;;  %s562_s12 = sphi %s608_s12, %s751_s12  }
   0x5   : > { %s28_s20 = sadd.s32 1, %s578_s16  ;;  %s107_s21 = sadd.s32 1, %s570_s14 }
   0x6   : > { %p30_p0 = scmp.ge.s32.totalorder %s28_s20, 2  ;;  %p117_p1 = scmp.ne.s32.totalorder %s570_s14, %s566_s13 }
   0x7   : > { %p118_p2 = scmp.eq.s32.totalorder %s419_s18, 1  ;;  %p123_p3 = scmp.ne.s32.totalorder %s566_s13, %s562_s12 }
   0x8   : > { %s757_s20 = smov (%p30_p0, %s28_s20), 0  ;;  %p124_p5 = scmp.eq.s32.totalorder %s420_s19, 1 }
   0x9   : > { %p648_p4 = por %p118_p2, %p117_p1  ;;  %s102_s23 = ssub.s32 %s578_s16, %s757_s20 }
   0xa   : > { %p423_p6 = scmp.ge.s32.totalorder %s582_s17, 1  ;;  %p105_p7 = scmp.eq.s32.totalorder %s102_s23, 0 }
   0xb   : > { %p655_p8 = por %p124_p5, %p123_p3  ;;  %p161_p9 = scmp.lt.s32.totalorder %s582_s17, 3 }
   0xc   : > { %s661_s25 = scalar_select %p105_p7, %s570_s14, %s107_s21  }
   0xd   : > { %p162_p10 = pnand %p423_p6, %p161_p9 }
   0xe   : > { %p190_p11 = scmp.lt.s32.totalorder (!%p162_p10), %s574_s15, 1  ;;  %v584_v0 = vmov (!%p162_p10), 0   ;;  %v208_v1 = vld [vmem:[%s747_s2 + $0x10] sm:$0xff] (!%p162_p10)  ;;  %v206_v2 = vld [vmem:[%s747_s2] sm:$0xff] (!%p162_p10)  ;;  %vm256_vm0 = vcmask (!%p162_p10), 1041408   ;;  %v209_v3 = vld [vmem:[%s747_s2 + $0x18] sm:$0xff] (!%p162_p10) }
   0xf   : > { %165 = sbr.rel (%p162_p10) target bundleno = 265 (0x109), region = 32  ;;  %295 = vmatprep.mubr.bf16.mxu0 (!%p162_p10), %v584_v0  ;;  %305 = vmatprep.mubr.bf16.mxu1 (!%p162_p10), %v584_v0  ;;  %v207_v4 = vld [vmem:[%s747_s2 + $0x8] sm:$0xff] (!%p162_p10)  ;;  %v502_v8 = vld [vmem:[%s746_s1] sm:$0xff] (!%p162_p10)   ;;  %vm249_vm1 = vcmask (!%p162_p10), 31744   ;;  %s439_s28 = sshll.u32 (!%p162_p10), %s574_s15, 10 }
  0x10   : > { %501 = vset.pattern.permute.xlu1 (!%p162_p10), %v584_v0  ;;  %500 = vset.pattern.permute.xlu0 (!%p162_p10), %v584_v0  ;;  %v503_v9 = vld [vmem:[%s746_s1 + $0x8] sm:$0xff] (!%p162_p10)   ;;  %s693_s5 = scalar_lea.hbm (!%p162_p10), %s748_s3, %s439_s28  ;;  %s585_s8 = smov (!%p162_p10), [#allocation2]  }
  0x11   : > { %222 = vperm.xlu1 (!%p162_p10), %501, %v208_v1   ;;  %212 = vperm.xlu0 (!%p162_p10), %500, %v206_v2   ;;  %s508_s9 = sshll.u32 (!%p162_p10), %s585_s8, 4  ;;  %s509_s9 = int_to_ptr.vmem [resolvable:$false] %s508_s9 }
  0x12   : > { %s510_s10 = scalar_lea.vmem (!%p162_p10), %s509_s9, 2048 }
  0x15   : > { %227 = vperm.xlu1 (!%p162_p10), %501, %v209_v3   ;;  %217 = vperm.xlu0 (!%p162_p10), %500, %v207_v4  }
  0x16   : > { %s191_s26 = scalar_select %p190_p11, %s574_s15, 1 }
  0x18   : > { %s438_s4 = sshll.u32 %s191_s26, 2  ;;  %s186_s26 = sand.u32 1, %s566_s13  }
  0x19   : > { %s197_s11 = scalar_lea.vmem %s745_s0, %s438_s4  ;;  %s424_s27 = sshll.u32 %s186_s26, 6 }
  0x1a   : > { %v429_v5 = vld.sshfl [vmem:[%s197_s11] sm:$0x33 pattern:$0x76325410]  ;;  %s188_s29 = scalar_lea.vmem [#allocation2], %s424_s27  ;;  %s699_s6 = scalar_lea.sflag [#allocation3], %s186_s26 }
  0x1b   : > { %v248_v6 = vcombine.high %v429_v5, %v429_v5  ;;  %v258_v7 = vsel %vm256_vm0, %v429_v5, 0  ;;  %s340_s30 = sshll.u32 %s188_s29, 4  ;;  %s695_s30 = int_to_ptr.vmem [resolvable:$true] %s340_s30 }
  0x1c   : > { %s504_s7 = scalar_lea.vmem %s695_s30, 1024  ;;  %p511_p1 = scmp.lt.s32.totalorder %s695_s30, %s509_s9 }
  0x1d   : > { %430 = vmatprep.subr.msk.bf16.mxu0 %vm256_vm0, %v248_v6  ;;  %440 = vmatprep.subr.msk.bf16.mxu1 %vm256_vm0, %v248_v6  ;;  %p505_p12 = scmp.ne.s32.totalorder %s695_s30, %s504_s7  ;;  %p512_p2 = scmp.lt.s32.totalorder %s510_s10, %s504_s7 }
  0x1e   : > { %264 = vmatpush1.bf16.msra.mxu0 %v258_v7  ;;  %441 = vmatpush1.bf16.msra.mxu1 %v258_v7 }
  0x1f   : > { %p506_p13 = pnand %p505_p12, %p648_p4  ;;  %p513_p3 = por %p512_p2, %p511_p1 }
  0x21   : > { %431 = vmatmul.mubr.msk.bf16.vlgmr.msra.gmra.mrb[0].mxu0 %vm249_vm1, %v502_v8  ;;  %432 = vmatmul.mubr.msk.bf16.vlgmr.msra.gmra.mrb[0].mxu1 %vm249_vm1, %v503_v9  ;;  %p507_p0 = pneg %p506_p13 }
  0x23   : > { %p514_p5 = pnand %p513_p3, %p507_p0 }
  0x90   : > { %v223_v10 = vpop.permute.xlu1 %222  ;;  %v213_v11 = vpop.permute.xlu0 %212 }
  0x94   : > { %v228_v12 = vpop.permute.xlu1 %227  ;;  %v218_v13 = vpop.permute.xlu0 %217 }
  0xf4   : > { %v297_v14 = vpop.f32.mrb[0].mxu0  ;;  %v307_v15 = vpop.f32.mrb[0].mxu1 }
  0xf5   : > { %v298_v16 = vadd.f32 %v297_v14, %v213_v11  ;;  %v308_v17 = vadd.f32 %v307_v15, %v223_v10  ;;  %v299_v18 = vpop.f32.mrb[1].mxu0  ;;  %v309_v19 = vpop.f32.mrb[1].mxu1 }
  0xf6   : > { %v300_v20 = vadd.f32 %v299_v18, %v213_v11  ;;  %v310_v21 = vadd.f32 %v309_v19, %v223_v10  ;;  %v301_v22 = vpop.f32.mrb[2].mxu0  ;;  %v311_v23 = vpop.f32.mrb[2].mxu1 }
  0xf7   : > { %316 = vst [vmem:[%s188_s29] sm:$0xff] %v298_v16  ;;  %320 = vst [vmem:[%s188_s29 + $0x20] sm:$0xff] %v308_v17  ;;  %v302_v24 = vadd.f32 %v301_v22, %v218_v13  ;;  %v312_v25 = vadd.f32 %v311_v23, %v228_v12  ;;  %v303_v26 = vpop.f32.mrb[3].mxu0  ;;  %v313_v27 = vpop.f32.mrb[3].mxu1 }
  0xf8   : > { %317 = vst [vmem:[%s188_s29 + $0x8] sm:$0xff] %v300_v20  ;;  %321 = vst [vmem:[%s188_s29 + $0x28] sm:$0xff] %v310_v21  ;;  %v304_v28 = vadd.f32 %v303_v26, %v218_v13  ;;  %v314_v29 = vadd.f32 %v313_v27, %v228_v12 }
  0xf9   : > { %318 = vst [vmem:[%s188_s29 + $0x10] sm:$0xff] %v302_v24  ;;  %322 = vst [vmem:[%s188_s29 + $0x30] sm:$0xff] %v312_v25 }
  0xfa   : > { %319 = vst [vmem:[%s188_s29 + $0x18] sm:$0xff] %v304_v28  ;;  %323 = vst [vmem:[%s188_s29 + $0x38] sm:$0xff] %v314_v29 }
  0xfb   : > { %517 = shalt.err (!%p514_p5)
}
  0xfc   : > { %s518_s11 = scalar_lea.hbm %s693_s5, 1024  ;;  %s522_s21 = scalar_lea.hbm %s748_s3, 2048 }
  0xfd   : > { %p519_p6 = scmp.ne.s32.totalorder %s693_s5, %s518_s11  ;;  %p523_p10 = scmp.lt.u32.totalorder %s693_s5, %s748_s3 }
  0xfe   : > { %p524_p11 = scmp.lt.u32.totalorder %s522_s21, %s518_s11  ;;  %p526_p13 = scmp.lt.u32.totalorder %s518_s11, %s693_s5 }
  0xff   : > { %p520_p7 = pnand %p519_p6, %p648_p4 }
 0x100   : > { %p525_p12 = por %p524_p11, %p523_p10 }
 0x101   : > { %p521_p9 = pneg %p520_p7 }
 0x102   : > { %p527_p0 = por %p526_p13, %p525_p12 }
 0x104   : > { %p528_p1 = pnand %p527_p0, %p521_p9 }
 0x106   : > { %531 = shalt.err (!%p528_p1)
}
 0x107   : > { %s586_s27 = smov 256   ;;  %s587_s28 = smov 16  }
 0x108   : > { %442 = dma.vmem_to_hbm [thread:$0]  (%p648_p4), %s695_s30, 1024, %s693_s5, %s699_s6, %s586_s27, %s586_s27, %s587_s28  }
 0x109 PF: > { %p448_p2 = scmp.ge.s32.totalorder %s582_s17, 2  ;;  %s355_s29 = sand.u32 1, %s562_s12  }
 0x10a   : > { %s356_s4 = scalar_lea.sflag [#allocation3], %s355_s29 }
 0x10b   : > { %p445_p3 = pnand %p448_p2, %p655_p8 }
 0x10d   : > { %557 = dma.done.wait (!%p445_p3), %s356_s4, 1024  }
 0x10e   : > { %559 = vsyncadd (!%p445_p3), %s356_s4, 4294966272  ;;  %s16_s17 = sadd.s32 1, %s582_s17   ;;  %s751_s12 = smov %s566_s13 }
 0x10f   : > { %p13_p5 = scmp.ge.s32.totalorder %s16_s17, 4   ;;  %s752_s13 = smov %s570_s14 }
 0x110   : > { %s753_s14 = smov %s661_s25  ;;  %s754_s15 = smov %s578_s16 }
 0x111   : > { %s755_s16 = smov %s757_s20  ;;  %15 = sbr.rel (!%p13_p5) target bundleno = 4 (0x4), region = 67 }
 0x118   :  { %361 = vsyncpa [#allocation3], 1 }
 0x119   :  { %363 = vsyncpa [#allocation3 + $0x1], 1 }

</bundles_post_ra>
